<compile_context>
chip_gen: v5e
topology: v5e:2x2
jax: 0.10.0
libtpu: 0.0.40
codegen_flags: <defaults>
</compile_context>

<pallas_src>
import math
from functools import partial

import numpy as np
import jax
import jax.numpy as jnp
from jax.experimental import pallas as pl
from jax.experimental.pallas import tpu as pltpu


_REPEAT = 10  # hard-coded repeat_interleave(10, dim=0) in the torch reference


# -----------------------------------------------------------------------------
# Host-side (numpy) construction of the frozen sin/cos table, identical to the
# torch module's buffer init (parameter setup, not part of the hot path).
# -----------------------------------------------------------------------------
def _get_grid(grid_size):
    grid_h = np.arange(grid_size[0], dtype=float)
    grid_w = np.arange(grid_size[1], dtype=float)
    grid = np.meshgrid(grid_w, grid_h)
    grid = np.stack(grid, axis=0)
    return grid.reshape([2, 1, grid_size[0], grid_size[1]])


def _get_1d_sincos_pos_embed_from_grid(embed_dim, pos):
    assert embed_dim % 2 == 0
    omega = np.arange(embed_dim // 2, dtype=float)
    omega /= embed_dim / 2.0
    omega = 1.0 / 10000 ** omega
    pos = pos.reshape(-1)
    out = np.einsum("m,d->md", pos, omega)
    return np.concatenate([np.sin(out), np.cos(out)], axis=1)


# -----------------------------------------------------------------------------
# Fused Pallas kernel: normalize (scale/shift from SMEM) + repeat_interleave(10)
# via sublane broadcast + write-once concat with emb_h (two direct sub-stores).
# -----------------------------------------------------------------------------
def _pe_kernel(scales_ref, proj_ref, embh_ref, out_ref, *, c_half, repeat):
    # scales_ref: SMEM (2,) holding [scale, shift] with emb_w = proj*scale + shift
    scale = scales_ref[0]
    shift = scales_ref[1]

    yn = proj_ref[...] * scale + shift                       # (tm, 1, C) f32
    tm = yn.shape[0]
    rep = jnp.broadcast_to(yn, (tm, repeat, c_half))         # fused repeat_interleave(10)

    # Two lane-aligned direct stores (c_half is a multiple of 128 in the default
    # config) -> no concatenated temp, each output block hits HBM exactly once.
    out_ref[:, :, :c_half] = embh_ref[...]                   # left half : frozen sin/cos
    out_ref[:, :, c_half:] = rep                             # right half: normalized proj


# -----------------------------------------------------------------------------
# Tiling helpers (per-generation VMEM budget, padding-aware block accounting).
# -----------------------------------------------------------------------------
def _round_up(n, mult):
    return -(-n // mult) * mult


def _vmem_budget_and_limit():
    total = None
    try:
        info = pltpu.get_tpu_info()
        for name in ("vmem_capacity_bytes", "vmem_size_bytes", "vmem_bytes"):
            val = getattr(info, name, None)
            if val:
                total = int(val)
                break
    except Exception:
        total = None
    if not total:
        total = 64 << 20                       # conservative default = v7x per-TC VMEM
    limit = min((total * 3) // 4, 96 << 20)    # explicit scoped-VMEM limit we request
    budget = max(limit // 3, 4 << 20)          # double-buffered block budget (headroom
    return budget, limit                       # for Mosaic internal scratch etc.)


def _choose_row_tile(m, bytes_per_row, vmem_budget):
    """Largest row tile that fits the (padding-aware) VMEM budget."""
    cap = int(max(1, vmem_budget // max(bytes_per_row, 1)))
    if m <= cap:
        return m
    for t in range(cap, max(cap // 2, 1), -1):   # prefer an exact divisor near the cap
        if m % t == 0:
            return t
    return cap                                    # cdiv grid masks the partial tail block


# -----------------------------------------------------------------------------
# Forward wrapper.
# -----------------------------------------------------------------------------
def grad_ts_2d_pe_forward(gradient, weight, bias, emb_h, *, cls_token=False, repeat=_REPEAT):
    """Fused forward of GradTs_2dPE (add_w='mapping').

    gradient: (1, M, in_chan) or (M, in_chan)
    weight:   (embed_dim//2, in_chan)  -- torch nn.Linear layout
    bias:     (embed_dim//2,)
    emb_h:    (M * repeat, embed_dim//2) frozen sin/cos table
    returns:  (1, M*repeat (+1 if cls_token), embed_dim) float32
    """
    g = jnp.asarray(gradient, jnp.float32)
    g2 = g.reshape(-1, g.shape[-1])                      # torch .squeeze() for B == 1
    m, _ = g2.shape
    c_half = weight.shape[0]
    d = 2 * c_half
    r = repeat
    assert emb_h.shape == (m * r, c_half), (emb_h.shape, (m * r, c_half))

    # --- tiny plain-JAX part (hoisted per review): projection + global min/max ----
    proj = jnp.dot(g2, jnp.asarray(weight, jnp.float32).T) + jnp.asarray(bias, jnp.float32)
    lo = jnp.min(proj)
    hi = jnp.max(proj)
    denom = hi - lo
    # torch divides by (max - min) unguarded; map a constant projection to all -1
    # instead of emitting NaNs (documented divergence).
    scale = jnp.where(denom > 0.0, 2.0 / denom, 0.0)
    shift = -lo * scale - 1.0
    scales = jnp.stack([scale, shift]).astype(jnp.float32)       # (2,) -> SMEM

    # 3-D views so every in-kernel value is born in its output-facing layout.
    proj3 = proj.reshape(m, 1, c_half)
    emb_h3 = jnp.asarray(emb_h, jnp.float32).reshape(m, r, c_half)

    # --- tile sizing: double-buffered, sublane/lane-padding-aware VMEM blocks ----
    r_pad = _round_up(r, 8)                              # 10 -> 16 sublanes in VMEM
    bytes_per_row = 2 * 4 * (r_pad * _round_up(d, 128)           # out block
                             + r_pad * _round_up(c_half, 128)    # emb_h block
                             + 8 * _round_up(c_half, 128))       # proj block (1 -> 8 sublanes)
    vmem_budget, vmem_limit = _vmem_budget_and_limit()
    tm = _choose_row_tile(m, bytes_per_row, vmem_budget)
    n_tiles = pl.cdiv(m, tm)

    out = pl.pallas_call(
        partial(_pe_kernel, c_half=c_half, repeat=r),
        out_shape=jax.ShapeDtypeStruct((m, r, d), jnp.float32),
        grid_spec=pltpu.PrefetchScalarGridSpec(
            num_scalar_prefetch=0,
            grid=(n_tiles,),                              # single row-tile axis
            in_specs=[
                pl.BlockSpec(memory_space=pltpu.MemorySpace.SMEM),   # (2,) scale/shift
                pl.BlockSpec((tm, 1, c_half), lambda j: (j, 0, 0)),   # proj tile
                pl.BlockSpec((tm, r, c_half), lambda j: (j, 0, 0)),   # emb_h tile
            ],
            out_specs=pl.BlockSpec((tm, r, d), lambda j: (j, 0, 0)),
        ),
        compiler_params=pltpu.CompilerParams(
            # tiles are fully independent -> v7x megacore splits the row axis
            dimension_semantics=("parallel",),
            vmem_limit_bytes=int(vmem_limit),
        ),
        cost_estimate=pl.CostEstimate(
            flops=2 * m * r * c_half,
            transcendentals=0,
            bytes_accessed=4 * (m * c_half + m * r * c_half + m * r * d) + 8,
        ),
    )(scales, proj3, emb_h3)

    emb = out.reshape(1, m * r, d)        # free row-major view == repeat_interleave order
    if cls_token:
        emb = jnp.concatenate([jnp.zeros((1, 1, d), emb.dtype), emb], axis=1)
    return emb


class GradTs2dPE:
    """JAX/Pallas port of GradTs_2dPE.  The add_w='mapping' hot path runs as one
    fused Pallas kernel; add_w='origin' / cls_token are pure layout in plain JAX."""

    def __init__(self, in_chan, embed_dim, grid_size, add_w="mapping",
                 cls_token=False, key=None):
        assert embed_dim % 2 == 0
        self.add_w = add_w
        self.cls_token = cls_token
        c_half = embed_dim // 2
        grid = _get_grid(grid_size)
        self.emb_h = jnp.asarray(
            _get_1d_sincos_pos_embed_from_grid(c_half, grid[0]), jnp.float32)
        if add_w == "origin":
            self.emb_w = jnp.asarray(
                _get_1d_sincos_pos_embed_from_grid(c_half, grid[1]), jnp.float32)
        if add_w == "mapping":
            key = jax.random.PRNGKey(0) if key is None else key
            kw, kb = jax.random.split(key)
            bound = 1.0 / math.sqrt(in_chan)              # torch nn.Linear default init
            self.weight = jax.random.uniform(kw, (c_half, in_chan), jnp.float32, -bound, bound)
            self.bias = jax.random.uniform(kb, (c_half,), jnp.float32, -bound, bound)

    def __call__(self, gradient):
        if self.add_w in (None, "mapping"):
            return grad_ts_2d_pe_forward(gradient, self.weight, self.bias,
                                         self.emb_h, cls_token=self.cls_token)
        if self.add_w == "origin":
            emb = jnp.concatenate([self.emb_h, self.emb_w], axis=1)[None]
            if self.cls_token:
                emb = jnp.concatenate(
                    [jnp.zeros((1, 1, emb.shape[-1]), emb.dtype), emb], axis=1)
            return emb
        raise ValueError("self.add_w error")


if __name__ == "__main__":
    in_chan = 4
    embed_dim = 256              # embed_dim//2 = 128 -> lane-aligned halves
    grid_size = (16, 10)         # 160 positions = 10 * M  ->  M = 16 gradient rows
    m = grid_size[0] * grid_size[1] // _REPEAT

    key = jax.random.PRNGKey(0)
    k_mod, k_grad = jax.random.split(key)
    module = GradTs2dPE(in_chan, embed_dim, grid_size, add_w="mapping",
                        cls_token=False, key=k_mod)
    gradient = jax.random.normal(k_grad, (1, m, in_chan), jnp.float32)

    out = jax.block_until_ready(module(gradient))

    # pure-JAX reference of the torch forward
    proj = gradient.reshape(m, in_chan) @ module.weight.T + module.bias
    emb_w = jnp.repeat(proj, _REPEAT, axis=0)
    emb_w = (emb_w - emb_w.min()) / (emb_w.max() - emb_w.min()) * 2.0 - 1.0
    ref = jnp.concatenate([module.emb_h, emb_w], axis=1)[None]

    assert out.shape == (1, grid_size[0] * grid_size[1], embed_dim), out.shape
    err = float(jnp.max(jnp.abs(out - ref)))
    if not (err <= 1e-4):
        raise SystemExit(f"numerical mismatch vs reference: max abs err = {err}")
    print("KERNEL_OK")
</pallas_src>

<mosaic_0001>
module attributes {stable_mosaic.version = 11 : i64} {
  func.func @_pe_kernel(%arg0: i32, %arg1: memref<2xf32, #tpu.memory_space<smem>>, %arg2: memref<16x1x128xf32, #tpu.memory_space<vmem>>, %arg3: memref<16x10x128xf32, #tpu.memory_space<vmem>>, %arg4: memref<16x10x256xf32, #tpu.memory_space<vmem>>) attributes {dimension_semantics = [#tpu.dimension_semantics<parallel>], iteration_bounds = array<i64: 1>, scalar_prefetch = 0 : i64, scratch_operands = 0 : i64, tpu.core_type = #tpu.core_type<tc>, window_params = [{transform_indices = @transform_0, window_bounds = array<i64: 2>}, {transform_indices = @transform_1, window_bounds = array<i64: 16, 1, 128>}, {transform_indices = @transform_2, window_bounds = array<i64: 16, 10, 128>}, {transform_indices = @transform_3, window_bounds = array<i64: 16, 10, 256>}]} {
    %c0 = arith.constant 0 : index
    %0 = memref.load %arg1[%c0] : memref<2xf32, #tpu.memory_space<smem>>
    %c1 = arith.constant 1 : index
    %1 = memref.load %arg1[%c1] : memref<2xf32, #tpu.memory_space<smem>>
    %c0_0 = arith.constant 0 : index
    %c0_1 = arith.constant 0 : index
    %c0_2 = arith.constant 0 : index
    %2 = vector.load %arg2[%c0_0, %c0_1, %c0_2] : memref<16x1x128xf32, #tpu.memory_space<vmem>>, vector<16x1x128xf32>
    %3 = vector.broadcast %0 : f32 to vector<16x1x128xf32>
    %4 = arith.mulf %2, %3 : vector<16x1x128xf32>
    %5 = vector.broadcast %1 : f32 to vector<16x1x128xf32>
    %6 = arith.addf %4, %5 : vector<16x1x128xf32>
    %7 = vector.shape_cast %6 : vector<16x1x128xf32> to vector<16x1x128xf32>
    %8 = vector.broadcast %7 : vector<16x1x128xf32> to vector<16x10x128xf32>
    %c0_3 = arith.constant 0 : index
    %c0_4 = arith.constant 0 : index
    %c0_5 = arith.constant 0 : index
    %9 = vector.load %arg3[%c0_3, %c0_4, %c0_5] : memref<16x10x128xf32, #tpu.memory_space<vmem>>, vector<16x10x128xf32>
    %c0_6 = arith.constant 0 : index
    %c0_7 = arith.constant 0 : index
    %c0_8 = arith.constant 0 : index
    %10 = vector.load %arg4[%c0_6, %c0_7, %c0_8] : memref<16x10x256xf32, #tpu.memory_space<vmem>>, vector<16x10x128xf32>
    tpu.vector_store %arg4[%c0_6, %c0_7, %c0_8], %9 {strides = array<i32>} : memref<16x10x256xf32, #tpu.memory_space<vmem>>, vector<16x10x128xf32>,
    %c0_9 = arith.constant 0 : index
    %c0_10 = arith.constant 0 : index
    %c128 = arith.constant 128 : index
    %11 = vector.load %arg4[%c0_9, %c0_10, %c128] : memref<16x10x256xf32, #tpu.memory_space<vmem>>, vector<16x10x128xf32>
    tpu.vector_store %arg4[%c0_9, %c0_10, %c128], %8 {strides = array<i32>} : memref<16x10x256xf32, #tpu.memory_space<vmem>>, vector<16x10x128xf32>,
    return
  }
  func.func @transform_0(%arg0: i32) -> i32 {
    %c0_i32 = arith.constant 0 : i32
    %c0_i32_0 = arith.constant 0 : i32
    return %c0_i32 : i32
  }
  func.func @transform_1(%arg0: i32) -> (i32, i32, i32) {
    %c0_i32 = arith.constant 0 : i32
    %c0_i32_0 = arith.constant 0 : i32
    %c0_i32_1 = arith.constant 0 : i32
    return %arg0, %c0_i32, %c0_i32_0 : i32, i32, i32
  }
  func.func @transform_2(%arg0: i32) -> (i32, i32, i32) {
    %c0_i32 = arith.constant 0 : i32
    %c0_i32_0 = arith.constant 0 : i32
    %c0_i32_1 = arith.constant 0 : i32
    return %arg0, %c0_i32, %c0_i32_0 : i32, i32, i32
  }
  func.func @transform_3(%arg0: i32) -> (i32, i32, i32) {
    %c0_i32 = arith.constant 0 : i32
    %c0_i32_0 = arith.constant 0 : i32
    %c0_i32_1 = arith.constant 0 : i32
    return %arg0, %c0_i32, %c0_i32_0 : i32, i32, i32
  }
}

</mosaic_0001>

<bundles_post_ra>
// kernel: tpu_custom_call.1
= control target key start
LH: loop header
LB: loop body
LE: loop exit
PB: predicated region body
PF: predicated region fallthrough
CT: control target
= control target key end

     0   :  { %8 = vsyncpa [#allocation3], 0  ;;  %s244_s15 = smov [#allocation2]   ;;  %s640_s0 = inlined_call_operand.vmem [shape: f32[2], index: 0, kind: input, shape index: {}]   ;;  %s641_s1 = inlined_call_operand.vmem [shape: f32[16,1,128], index: 1, kind: input, shape index: {}]   ;;  %s642_s2 = inlined_call_operand.vmem [shape: f32[16,10,128], index: 2, kind: input, shape index: {}]   ;;  %s643_s3 = inlined_call_operand.vmem [shape: f32[16,10,256], index: 3, kind: output, shape index: {}]  }
   0x1   :  { %s14_s14 = sshll.u32 %s640_s0, 4  ;;  %s15_s14 = int_to_ptr.vmem [resolvable:$true] %s14_s14 }
   0x2   :  { %17 = dma.vmem_to_smem %s15_s14, 16, %s244_s15, [#allocation3]  }
   0x3   :  { %242 = dma.done.wait [#allocation3], 16  }
   0x4   :  { %243 = vsyncadd [#allocation3], 4294967280 }
   0x5   :  { %26 = sfence }
   0x6   :  { %v127_v0 = vld [vmem:[%s642_s2] sm:$0xff]  ;;  %v128_v1 = vld [vmem:[%s642_s2 + $0x8] sm:$0x3]  ;;  %v129_v2 = vld [vmem:[%s642_s2 + $0x10] sm:$0xff]  ;;  %s27_s6 = sld [smem:[#allocation2]] }
   0x7   :  { %159 = vst [vmem:[%s643_s3] sm:$0xff] %v127_v0  ;;  %v130_v3 = vld [vmem:[%s642_s2 + $0x18] sm:$0x3]  ;;  %v131_v4 = vld [vmem:[%s642_s2 + $0x20] sm:$0xff]  ;;  %v132_v5 = vld [vmem:[%s642_s2 + $0x28] sm:$0x3]  ;;  %s228_s0 = sld [smem:[#allocation2 + $0x1]] }
   0x8   :  { %160 = vst [vmem:[%s643_s3 + $0x10] sm:$0x3] %v128_v1  ;;  %v133_v6 = vld [vmem:[%s642_s2 + $0x30] sm:$0xff]  ;;  %v134_v7 = vld [vmem:[%s642_s2 + $0x38] sm:$0x3]  ;;  %v135_v8 = vld [vmem:[%s642_s2 + $0x40] sm:$0xff] }
   0x9   :  { %161 = vst [vmem:[%s643_s3 + $0x20] sm:$0xff] %v129_v2  ;;  %v136_v9 = vld [vmem:[%s642_s2 + $0x48] sm:$0x3]  ;;  %v137_v10 = vld [vmem:[%s642_s2 + $0x50] sm:$0xff]  ;;  %v138_v11 = vld [vmem:[%s642_s2 + $0x58] sm:$0x3] }
   0xa   :  { %162 = vst [vmem:[%s643_s3 + $0x30] sm:$0x3] %v130_v3  ;;  %v139_v12 = vld [vmem:[%s642_s2 + $0x60] sm:$0xff]  ;;  %v140_v13 = vld [vmem:[%s642_s2 + $0x68] sm:$0x3]  ;;  %v141_v14 = vld [vmem:[%s642_s2 + $0x70] sm:$0xff] }
   0xb   :  { %163 = vst [vmem:[%s643_s3 + $0x40] sm:$0xff] %v131_v4  ;;  %v142_v15 = vld [vmem:[%s642_s2 + $0x78] sm:$0x3]  ;;  %v143_v16 = vld [vmem:[%s642_s2 + $0x80] sm:$0xff]  ;;  %v144_v17 = vld [vmem:[%s642_s2 + $0x88] sm:$0x3] }
   0xc   :  { %164 = vst [vmem:[%s643_s3 + $0x50] sm:$0x3] %v132_v5  ;;  %v145_v18 = vld [vmem:[%s642_s2 + $0x90] sm:$0xff]  ;;  %v146_v19 = vld [vmem:[%s642_s2 + $0x98] sm:$0x3]  ;;  %v147_v20 = vld [vmem:[%s642_s2 + $0xa0] sm:$0xff] }
   0xd   :  { %165 = vst [vmem:[%s643_s3 + $0x60] sm:$0xff] %v133_v6  ;;  %v29_v21 = vld [vmem:[%s641_s1] sm:$0x1]  ;;  %v388_v22 = vstv %s27_s6  ;;  %v148_v23 = vld [vmem:[%s642_s2 + $0xa8] sm:$0x3] }
   0xe   :  { %166 = vst [vmem:[%s643_s3 + $0x70] sm:$0x3] %v134_v7  ;;  %v149_v24 = vld [vmem:[%s642_s2 + $0xb0] sm:$0xff]  ;;  %v30_v25 = vld [vmem:[%s641_s1 + $0x1] sm:$0x1]  ;;  %v46_v27 = vmul.f32 %v388_v22, %v29_v21  ;;  %v418_v29 = vstv %s228_s0 }
   0xf   :  { %167 = vst [vmem:[%s643_s3 + $0x80] sm:$0xff] %v135_v8  ;;  %v150_v26 = vld [vmem:[%s642_s2 + $0xb8] sm:$0x3]  ;;  %v151_v28 = vld [vmem:[%s642_s2 + $0xc0] sm:$0xff]  ;;  %v152_v31 = vld [vmem:[%s642_s2 + $0xc8] sm:$0x3]  ;;  %v47_v32 = vmul.f32 %v388_v22, %v30_v25 }
  0x10   :  { %168 = vst [vmem:[%s643_s3 + $0x90] sm:$0x3] %v136_v9  ;;  %v31_v30 = vld [vmem:[%s641_s1 + $0x2] sm:$0x1]  ;;  %v153_v33 = vld [vmem:[%s642_s2 + $0xd0] sm:$0xff]  ;;  %v63_v36 = vadd.f32 %v418_v29, %v46_v27 }
  0x11   :  { %169 = vst [vmem:[%s643_s3 + $0xa0] sm:$0xff] %v137_v10  ;;  %v32_v34 = vld [vmem:[%s641_s1 + $0x3] sm:$0x1]  ;;  %v154_v35 = vld [vmem:[%s642_s2 + $0xd8] sm:$0x3]  ;;  %v48_v37 = vmul.f32 %v388_v22, %v31_v30  ;;  %v64_v41 = vadd.f32 %v418_v29, %v47_v32  ;;  %v157_v43 = vld [vmem:[%s642_s2 + $0xf0] sm:$0xff] }
  0x12   :  { %170 = vst [vmem:[%s643_s3 + $0xb0] sm:$0x3] %v138_v11  ;;  %v155_v38 = vld [vmem:[%s642_s2 + $0xe0] sm:$0xff]  ;;  %v156_v40 = vld [vmem:[%s642_s2 + $0xe8] sm:$0x3]  ;;  %v49_v42 = vmul.f32 %v388_v22, %v32_v34  ;;  %v95_v46 = vperm.slane %v63_v36, 0 }
  0x13   :  { %171 = vst [vmem:[%s643_s3 + $0xc0] sm:$0xff] %v139_v12  ;;  %v33_v39 = vld [vmem:[%s641_s1 + $0x4] sm:$0x1]  ;;  %v34_v44 = vld [vmem:[%s641_s1 + $0x5] sm:$0x1]  ;;  %v65_v47 = vadd.f32 %v418_v29, %v48_v37  ;;  %v96_v50 = vperm.slane %v64_v41, 0 }
  0x14   :  { %172 = vst [vmem:[%s643_s3 + $0xd0] sm:$0x3] %v140_v13  ;;  %v158_v45 = vld [vmem:[%s642_s2 + $0xf8] sm:$0x3]  ;;  %v50_v48 = vmul.f32 %v388_v22, %v33_v39  ;;  %v35_v49 = vld [vmem:[%s641_s1 + $0x6] sm:$0x1]  ;;  %v66_v51 = vadd.f32 %v418_v29, %v49_v42  ;;  %v51_v52 = vmul.f32 %v388_v22, %v34_v44 }
  0x15   :  { %173 = vst [vmem:[%s643_s3 + $0xe0] sm:$0xff] %v141_v14  ;;  %v36_v53 = vld [vmem:[%s641_s1 + $0x7] sm:$0x1]  ;;  %v97_v54 = vperm.slane %v65_v47, 0  ;;  %v52_v56 = vmul.f32 %v388_v22, %v35_v49  ;;  %v37_v57 = vld [vmem:[%s641_s1 + $0x8] sm:$0x1] }
  0x16   :  { %174 = vst [vmem:[%s643_s3 + $0xf0] sm:$0x3] %v142_v15  ;;  %v67_v55 = vadd.f32 %v418_v29, %v50_v48  ;;  %v98_v58 = vperm.slane %v66_v51, 0  ;;  %v68_v59 = vadd.f32 %v418_v29, %v51_v52  ;;  %v53_v60 = vmul.f32 %v388_v22, %v36_v53  ;;  %v38_v61 = vld [vmem:[%s641_s1 + $0x9] sm:$0x1] }
  0x17   :  { %175 = vst [vmem:[%s643_s3 + $0x100] sm:$0xff] %v143_v16  ;;  %v69_v63 = vadd.f32 %v418_v29, %v52_v56  ;;  %v54_v0 = vmul.f32 %v388_v22, %v37_v57  ;;  %v39_v1 = vld [vmem:[%s641_s1 + $0xa] sm:$0x1]  ;;  %v55_v4 = vmul.f32 %v388_v22, %v38_v61  ;;  %v40_v5 = vld [vmem:[%s641_s1 + $0xb] sm:$0x1] }
  0x18   :  { %176 = vst [vmem:[%s643_s3 + $0x110] sm:$0x3] %v144_v17  ;;  %v99_v62 = vperm.slane %v67_v55, 0  ;;  %v100_v2 = vperm.slane %v68_v59, 0  ;;  %v70_v3 = vadd.f32 %v418_v29, %v53_v60  ;;  %v56_v8 = vmul.f32 %v388_v22, %v39_v1  ;;  %v41_v9 = vld [vmem:[%s641_s1 + $0xc] sm:$0x1] }
  0x19   :  { %177 = vst [vmem:[%s643_s3 + $0x120] sm:$0xff] %v145_v18  ;;  %v101_v6 = vperm.slane %v69_v63, 0  ;;  %v71_v7 = vadd.f32 %v418_v29, %v54_v0  ;;  %v72_v11 = vadd.f32 %v418_v29, %v55_v4  ;;  %v57_v12 = vmul.f32 %v388_v22, %v40_v5  ;;  %v42_v13 = vld [vmem:[%s641_s1 + $0xd] sm:$0x1]  ;;  %v43_v17 = vld [vmem:[%s641_s1 + $0xe] sm:$0x1] }
  0x1a   :  { %178 = vst [vmem:[%s643_s3 + $0x130] sm:$0x3] %v146_v19  ;;  %v102_v10 = vperm.slane %v70_v3, 0  ;;  %v73_v15 = vadd.f32 %v418_v29, %v56_v8  ;;  %v58_v16 = vmul.f32 %v388_v22, %v41_v9  ;;  %v44_v21 = vld [vmem:[%s641_s1 + $0xf] sm:$0x1]  ;;  %v60_v25 = vmul.f32 %v388_v22, %v43_v17 }
  0x1b   :  { %179 = vst [vmem:[%s643_s3 + $0x140] sm:$0xff] %v147_v20  ;;  %v103_v14 = vperm.slane %v71_v7, 0  ;;  %v104_v18 = vperm.slane %v72_v11, 0  ;;  %v74_v19 = vadd.f32 %v418_v29, %v57_v12  ;;  %v59_v20 = vmul.f32 %v388_v22, %v42_v13 }
  0x1c   :  { %180 = vst [vmem:[%s643_s3 + $0x150] sm:$0x3] %v148_v23  ;;  %v105_v23 = vperm.slane %v73_v15, 0 }
  0x1d   :  { %181 = vst [vmem:[%s643_s3 + $0x160] sm:$0xff] %v149_v24  ;;  %v75_v24 = vadd.f32 %v418_v29, %v58_v16  ;;  %v76_v27 = vadd.f32 %v418_v29, %v59_v20 }
  0x1e   :  { %182 = vst [vmem:[%s643_s3 + $0x170] sm:$0x3] %v150_v26  ;;  %v106_v26 = vperm.slane %v74_v19, 0 }
  0x1f   :  { %183 = vst [vmem:[%s643_s3 + $0x180] sm:$0xff] %v151_v28  ;;  %v61_v28 = vmul.f32 %v388_v22, %v44_v21  ;;  %v107_v30 = vperm.slane %v75_v24, 0  ;;  %v108_v22 = vperm.slane %v76_v27, 0 }
  0x20   :  { %184 = vst [vmem:[%s643_s3 + $0x190] sm:$0x3] %v152_v31  ;;  %v77_v31 = vadd.f32 %v418_v29, %v60_v25 }
  0x21   :  { %185 = vst [vmem:[%s643_s3 + $0x1a0] sm:$0xff] %v153_v33  ;;  %v78_v32 = vadd.f32 %v418_v29, %v61_v28 }
  0x22   :  { %186 = vst [vmem:[%s643_s3 + $0x1b0] sm:$0x3] %v154_v35  ;;  %v109_v33 = vperm.slane %v77_v31, 0 }
  0x23   :  { %187 = vst [vmem:[%s643_s3 + $0x1c0] sm:$0xff] %v155_v38  ;;  %v110_v34 = vperm.slane %v78_v32, 0 }
  0x24   :  { %188 = vst [vmem:[%s643_s3 + $0x1d0] sm:$0x3] %v156_v40 }
  0x25   :  { %189 = vst [vmem:[%s643_s3 + $0x1e0] sm:$0xff] %v157_v43 }
  0x26   :  { %190 = vst [vmem:[%s643_s3 + $0x1f0] sm:$0x3] %v158_v45 }
  0x27   :  { %191 = vst [vmem:[%s643_s3 + $0x8] sm:$0xff] %v95_v46 }
  0x28   :  { %192 = vst [vmem:[%s643_s3 + $0x18] sm:$0x3] %v95_v46 }
  0x29   :  { %193 = vst [vmem:[%s643_s3 + $0x28] sm:$0xff] %v96_v50 }
  0x2a   :  { %194 = vst [vmem:[%s643_s3 + $0x38] sm:$0x3] %v96_v50 }
  0x2b   :  { %195 = vst [vmem:[%s643_s3 + $0x48] sm:$0xff] %v97_v54 }
  0x2c   :  { %196 = vst [vmem:[%s643_s3 + $0x58] sm:$0x3] %v97_v54 }
  0x2d   :  { %197 = vst [vmem:[%s643_s3 + $0x68] sm:$0xff] %v98_v58 }
  0x2e   :  { %198 = vst [vmem:[%s643_s3 + $0x78] sm:$0x3] %v98_v58 }
  0x2f   :  { %199 = vst [vmem:[%s643_s3 + $0x88] sm:$0xff] %v99_v62 }
  0x30   :  { %200 = vst [vmem:[%s643_s3 + $0x98] sm:$0x3] %v99_v62 }
  0x31   :  { %201 = vst [vmem:[%s643_s3 + $0xa8] sm:$0xff] %v100_v2 }
  0x32   :  { %202 = vst [vmem:[%s643_s3 + $0xb8] sm:$0x3] %v100_v2 }
  0x33   :  { %203 = vst [vmem:[%s643_s3 + $0xc8] sm:$0xff] %v101_v6 }
  0x34   :  { %204 = vst [vmem:[%s643_s3 + $0xd8] sm:$0x3] %v101_v6 }
  0x35   :  { %205 = vst [vmem:[%s643_s3 + $0xe8] sm:$0xff] %v102_v10 }
  0x36   :  { %206 = vst [vmem:[%s643_s3 + $0xf8] sm:$0x3] %v102_v10 }
  0x37   :  { %207 = vst [vmem:[%s643_s3 + $0x108] sm:$0xff] %v103_v14 }
  0x38   :  { %208 = vst [vmem:[%s643_s3 + $0x118] sm:$0x3] %v103_v14 }
  0x39   :  { %209 = vst [vmem:[%s643_s3 + $0x128] sm:$0xff] %v104_v18 }
  0x3a   :  { %210 = vst [vmem:[%s643_s3 + $0x138] sm:$0x3] %v104_v18 }
  0x3b   :  { %211 = vst [vmem:[%s643_s3 + $0x148] sm:$0xff] %v105_v23 }
  0x3c   :  { %212 = vst [vmem:[%s643_s3 + $0x158] sm:$0x3] %v105_v23 }
  0x3d   :  { %213 = vst [vmem:[%s643_s3 + $0x168] sm:$0xff] %v106_v26 }
  0x3e   :  { %214 = vst [vmem:[%s643_s3 + $0x178] sm:$0x3] %v106_v26 }
  0x3f   :  { %215 = vst [vmem:[%s643_s3 + $0x188] sm:$0xff] %v107_v30 }
  0x40   :  { %216 = vst [vmem:[%s643_s3 + $0x198] sm:$0x3] %v107_v30 }
  0x41   :  { %217 = vst [vmem:[%s643_s3 + $0x1a8] sm:$0xff] %v108_v22 }
  0x42   :  { %218 = vst [vmem:[%s643_s3 + $0x1b8] sm:$0x3] %v108_v22 }
  0x43   :  { %219 = vst [vmem:[%s643_s3 + $0x1c8] sm:$0xff] %v109_v33 }
  0x44   :  { %220 = vst [vmem:[%s643_s3 + $0x1d8] sm:$0x3] %v109_v33 }
  0x45   :  { %221 = vst [vmem:[%s643_s3 + $0x1e8] sm:$0xff] %v110_v34 }
  0x46   :  { %222 = vst [vmem:[%s643_s3 + $0x1f8] sm:$0x3] %v110_v34 }
  0x47   :  { %227 = vsyncpa [#allocation3], 1 }

</bundles_post_ra>
